<compile_context>
chip_gen: v7x
topology: tpu7x:2x2x1
jax: 0.10.0
libtpu: 0.0.40
codegen_flags: <defaults>
</compile_context>

<pallas_src>
import jax
import jax.numpy as jnp
from jax.experimental import pallas as pl
from jax.experimental.pallas import tpu as pltpu

# DecodeBBox.__init__(mean=None, std=None) constants.  mean == 0, so the
# "+ mean" adds are dropped.
STD_XY = 0.1   # std[0], std[1]
STD_WH = 0.2   # std[2], std[3]

_LANES = 128
_SUBLANES = 8
_PAD_GRAN = _SUBLANES * _LANES     # 1024 elems = one (8,128) f32 layout granule

# The lane-roll trick below requires whole boxes per row.
assert _LANES % 4 == 0


def _round_up(x, m):
    return (x + m - 1) // m * m


def _decode_kernel(p_ref, a_ref, o_ref):
    # Blocks are (tm, 128) float32.  Lane layout (period 4):
    #   lane % 4 == 0 : x1 / dx      lane % 4 == 2 : x2 / dw
    #   lane % 4 == 1 : y1 / dy      lane % 4 == 3 : y2 / dh
    p = p_ref[...]
    a = a_ref[...]
    lanes = a.shape[-1]

    # Bring the (x2, y2) / (dw, dh) entries of the SAME box onto the
    # (x1, y1) / (dx, dy) lanes:  rolled[j] = orig[(j + 2) % lanes].
    # Wraparound lanes (126/127 -> 0/1) only pollute x2/y2-lane results, which
    # are discarded by the final select, so this is exact.
    a_hi = pltpu.roll(a, lanes - 2, 1)
    p_hi = pltpu.roll(p, lanes - 2, 1)

    # Everything below is computed "as if" every lane were an x1/y1 lane; only
    # lanes with (lane & 2) == 0 carry meaningful values (the rest is finite
    # garbage masked away at the end).
    wh = a_hi - a                              # anchor width / height
    wh_half = 0.5 * wh
    pred_ctr = (a + wh_half) + (p * STD_XY) * wh   # decoded centre
    # No clamp on dw/dh before exp -- the reference PyTorch module does not
    # clamp either, so semantics (incl. overflow) are preserved exactly.
    half_ext = jnp.exp(p_hi * STD_WH) * wh_half    # decoded half width/height

    lo = pred_ctr - half_ext                   # x1 / y1 of the decoded box
    hi = pltpu.roll(pred_ctr + half_ext, 2, 1)  # x2 / y2, moved to their lanes

    lane = jax.lax.broadcasted_iota(jnp.int32, (1, lanes), 1)
    o_ref[...] = jnp.where((lane & 2) == 0, lo, hi)


def decode_bbox(predicts, anchors, *, block_rows=8192):
    """predicts, anchors: (B, N, 4) float32 -> (B, N, 4) float32."""
    B, N, C = predicts.shape
    assert C == 4 and anchors.shape == predicts.shape
    total = B * N * 4

    p_flat = predicts.reshape(-1).astype(jnp.float32)
    a_flat = anchors.reshape(-1).astype(jnp.float32)

    # Minimal padding: only up to one (8,128) layout granule (<= ~4 KiB) and
    # only when B*N % 256 != 0.  Zero padding is inert (finite values, whole
    # boxes, sliced off afterwards).
    padded = _round_up(total, _PAD_GRAN)
    pad = padded - total
    if pad:
        # TODO(synk): a fully zero-copy ragged path (pl.ANY inputs + in-kernel
        # tail masking via manual DMA) would remove this extra pad/slice pass.
        p_flat = jnp.pad(p_flat, (0, pad))
        a_flat = jnp.pad(a_flat, (0, pad))

    M = padded // _LANES               # multiple of 8
    p2 = p_flat.reshape(M, _LANES)
    a2 = a_flat.reshape(M, _LANES)

    # Tile: as large as possible (<= block_rows, 4 MiB/block at 8192) but
    # capped so the grid has >= 2 steps whenever the data allows it, letting
    # the "parallel" axis shard across TensorCores (v7x megacore).
    tm = min(block_rows, M)
    if M > _SUBLANES and tm == M:
        tm = min(M, _round_up(pl.cdiv(M, 2), _SUBLANES))
    grid = (pl.cdiv(M, tm),)           # last block may be partial (clipped)

    spec = pl.BlockSpec((tm, _LANES), lambda i: (i, 0))
    out2 = pl.pallas_call(
        _decode_kernel,
        out_shape=jax.ShapeDtypeStruct((M, _LANES), jnp.float32),
        grid=grid,
        in_specs=[spec, spec],
        out_specs=spec,
        compiler_params=pltpu.CompilerParams(
            dimension_semantics=("parallel",),
            vmem_limit_bytes=32 * 1024 * 1024,
        ),
        cost_estimate=pl.CostEstimate(
            flops=10 * padded,
            transcendentals=padded,
            bytes_accessed=3 * padded * 4,
        ),
    )(p2, a2)

    out = out2.reshape(-1)
    if pad:
        out = out[:total]
    return out.reshape(B, N, 4)


def _reference(predicts, anchors):
    a_w = anchors[:, :, 2] - anchors[:, :, 0]
    a_h = anchors[:, :, 3] - anchors[:, :, 1]
    ctr_x = anchors[:, :, 0] + 0.5 * a_w
    ctr_y = anchors[:, :, 1] + 0.5 * a_h
    dx = predicts[:, :, 0] * STD_XY
    dy = predicts[:, :, 1] * STD_XY
    dw = predicts[:, :, 2] * STD_WH
    dh = predicts[:, :, 3] * STD_WH
    pcx = ctr_x + dx * a_w
    pcy = ctr_y + dy * a_h
    pw = jnp.exp(dw) * a_w
    ph = jnp.exp(dh) * a_h
    return jnp.stack(
        [pcx - 0.5 * pw, pcy - 0.5 * ph, pcx + 0.5 * pw, pcy + 0.5 * ph], axis=2
    )


if __name__ == "__main__":
    key = jax.random.PRNGKey(0)

    def make_inputs(k, B, N):
        kp, ka = jax.random.split(k)
        predicts = jax.random.normal(kp, (B, N, 4), dtype=jnp.float32) * 0.5
        xy = jax.random.uniform(ka, (B, N, 2), dtype=jnp.float32) * 100.0
        wh = jax.random.uniform(jax.random.fold_in(ka, 1), (B, N, 2),
                                dtype=jnp.float32) * 20.0 + 1.0
        anchors = jnp.concatenate([xy, xy + wh], axis=2)
        return predicts, anchors

    # (2,256): aligned, multi-step grid.  (2,300): pad path + partial last
    # block.  (1,3): tiny, pad path, single block.
    for i, (B, N) in enumerate([(2, 256), (2, 300), (1, 3)]):
        predicts, anchors = make_inputs(jax.random.fold_in(key, i), B, N)
        out = jax.block_until_ready(decode_bbox(predicts, anchors))
        ref = _reference(predicts, anchors)
        assert out.shape == (B, N, 4)
        assert jnp.allclose(out, ref, atol=1e-4, rtol=1e-4), (B, N)

    print("KERNEL_OK")
</pallas_src>

<mosaic_0001>
module attributes {stable_mosaic.version = 11 : i64} {
  func.func @_decode_kernel(%arg0: i32, %arg1: memref<8x128xf32, #tpu.memory_space<vmem>>, %arg2: memref<8x128xf32, #tpu.memory_space<vmem>>, %arg3: memref<8x128xf32, #tpu.memory_space<vmem>>) attributes {dimension_semantics = [#tpu.dimension_semantics<parallel>], iteration_bounds = array<i64: 2>, scalar_prefetch = 0 : i64, scratch_operands = 0 : i64, tpu.core_type = #tpu.core_type<tc>, window_params = [{transform_indices = @transform_0, window_bounds = array<i64: 8, 128>}, {transform_indices = @transform_1, window_bounds = array<i64: 8, 128>}, {transform_indices = @transform_2, window_bounds = array<i64: 8, 128>}]} {
    %c0 = arith.constant 0 : index
    %c0_0 = arith.constant 0 : index
    %0 = vector.load %arg1[%c0, %c0_0] : memref<8x128xf32, #tpu.memory_space<vmem>>, vector<8x128xf32>
    %c0_1 = arith.constant 0 : index
    %c0_2 = arith.constant 0 : index
    %1 = vector.load %arg2[%c0_1, %c0_2] : memref<8x128xf32, #tpu.memory_space<vmem>>, vector<8x128xf32>
    %c126_i32 = arith.constant 126 : i32
    %2 = tpu.dynamic_rotate %1 by %c126_i32 dim 1 : vector<8x128xf32>, i32 -> vector<8x128xf32>
    %c126_i32_3 = arith.constant 126 : i32
    %3 = tpu.dynamic_rotate %0 by %c126_i32_3 dim 1 : vector<8x128xf32>, i32 -> vector<8x128xf32>
    %4 = arith.subf %2, %1 : vector<8x128xf32>
    %cst = arith.constant 5.000000e-01 : f32
    %5 = vector.broadcast %cst : f32 to vector<8x128xf32>
    %6 = arith.mulf %5, %4 : vector<8x128xf32>
    %7 = arith.addf %1, %6 : vector<8x128xf32>
    %cst_4 = arith.constant 1.000000e-01 : f32
    %8 = vector.broadcast %cst_4 : f32 to vector<8x128xf32>
    %9 = arith.mulf %0, %8 : vector<8x128xf32>
    %10 = arith.mulf %9, %4 : vector<8x128xf32>
    %11 = arith.addf %7, %10 : vector<8x128xf32>
    %cst_5 = arith.constant 2.000000e-01 : f32
    %12 = vector.broadcast %cst_5 : f32 to vector<8x128xf32>
    %13 = arith.mulf %3, %12 : vector<8x128xf32>
    %14 = math.exp %13 : vector<8x128xf32>
    %15 = arith.mulf %14, %6 : vector<8x128xf32>
    %16 = arith.subf %11, %15 : vector<8x128xf32>
    %17 = arith.addf %11, %15 : vector<8x128xf32>
    %c2_i32 = arith.constant 2 : i32
    %18 = tpu.dynamic_rotate %17 by %c2_i32 dim 1 : vector<8x128xf32>, i32 -> vector<8x128xf32>
    %19 = tpu.iota {dimensions = array<i32: 1>} : vector<1x128xi32>
    %c2_i32_6 = arith.constant 2 : i32
    %20 = vector.broadcast %c2_i32_6 : i32 to vector<1x128xi32>
    %21 = arith.andi %19, %20 : vector<1x128xi32>
    %c0_i32 = arith.constant 0 : i32
    %22 = vector.broadcast %c0_i32 : i32 to vector<1x128xi32>
    %23 = arith.cmpi eq, %21, %22 : vector<1x128xi32>
    %24 = vector.shape_cast %23 : vector<1x128xi1> to vector<1x128xi1>
    %25 = vector.broadcast %24 : vector<1x128xi1> to vector<8x128xi1>
    %26 = arith.select %25, %16, %18 : vector<8x128xi1>, vector<8x128xf32>
    %c0_7 = arith.constant 0 : index
    %c0_8 = arith.constant 0 : index
    %27 = vector.load %arg3[%c0_7, %c0_8] : memref<8x128xf32, #tpu.memory_space<vmem>>, vector<8x128xf32>
    tpu.vector_store %arg3[%c0_7, %c0_8], %26 {strides = array<i32>} : memref<8x128xf32, #tpu.memory_space<vmem>>, vector<8x128xf32>,
    return
  }
  func.func @transform_0(%arg0: i32) -> (i32, i32) {
    %c0_i32 = arith.constant 0 : i32
    %c0_i32_0 = arith.constant 0 : i32
    return %arg0, %c0_i32 : i32, i32
  }
  func.func @transform_1(%arg0: i32) -> (i32, i32) {
    %c0_i32 = arith.constant 0 : i32
    %c0_i32_0 = arith.constant 0 : i32
    return %arg0, %c0_i32 : i32, i32
  }
  func.func @transform_2(%arg0: i32) -> (i32, i32) {
    %c0_i32 = arith.constant 0 : i32
    %c0_i32_0 = arith.constant 0 : i32
    return %arg0, %c0_i32 : i32, i32
  }
}

</mosaic_0001>

<bundles_post_ra>
// kernel: tpu_custom_call.1
= control target key start
LH: loop header
LB: loop body
LE: loop exit
PB: predicated region body
PF: predicated region fallthrough
CT: control target
= control target key end

     0   :  { %7 = vsyncpa [#allocation3], 0  ;;  %s767_s0 = inlined_call_operand.hbm [shape: f32[16,128], index: 0, kind: input, shape index: {}]   ;;  %s768_s1 = inlined_call_operand.hbm [shape: f32[16,128], index: 1, kind: input, shape index: {}]   ;;  %s769_s2 = inlined_call_operand.hbm [shape: f32[16,128], index: 2, kind: output, shape index: {}]  }
   0x1   :  { %9 = vsyncpa [#allocation3 + $0x1], 0 }
   0x2   :  { %10 = vsyncpa [#allocation6], 0 }
   0x3   :  { %12 = vsyncpa [#allocation6 + $0x1], 0 }
   0x4   :  { %13 = vsyncpa [#allocation4], 0 }
   0x5   :  { %15 = vsyncpa [#allocation4 + $0x1], 0  ;;  %s553_s9 = smov 0   ;;  %s555_s10 = smov 0  }
   0x6   :  { %s557_s11 = smov 0   ;;  %s559_s12 = smov 0  }
   0x7 LB: > { %s574_s13 = sadd.s32 4294967295, %s531_s12   ;;  %s331_s14 = sadd.s32 4294967294, %s531_s12   ;;  %s531_s12 = sphi %s559_s12, %s788_s12   ;;  %s527_s11 = sphi %s557_s11, %s787_s11   ;;  %s523_s10 = sphi %s555_s10, %s786_s10   ;;  %s519_s9 = sphi %s553_s9, %s785_s9  }
   0x8   : > { %s578_s15 = sadd.s32 1, %s531_s12   ;;  %s28_s16 = sadd.s32 1, %s527_s11 }
   0x9   : > { %s25_s17 = ssub.s32 %s531_s12, %s578_s15  ;;  %p35_p0 = scmp.ne.s32.totalorder %s527_s11, %s523_s10 }
   0xa   : > { %p26_p1 = scmp.eq.s32.totalorder %s25_s17, 0  ;;  %p36_p2 = scmp.eq.s32.totalorder %s531_s12, 0 }
   0xb   : > { %p41_p3 = scmp.ne.s32.totalorder %s523_s10, %s519_s9  ;;  %p42_p4 = scmp.eq.s32.totalorder %s574_s13, 0 }
   0xc   : > { %s590_s18 = scalar_select %p26_p1, %s527_s11, %s28_s16  }
   0xd   : > { %p592_p5 = por %p36_p2, %p35_p0  ;;  %p596_p6 = por %p42_p4, %p41_p3 }
   0xe   : > { %p91_p7 = scmp.eq.s32.totalorder %s574_s13, 1  ;;  %p97_p8 = scmp.eq.s32.totalorder %s331_s14, 1 }
   0xf   : > { %s773_s20 = scalar_select %p596_p6, 1, 0 }
  0x10   : > { %p363_p10 = scmp.lt.s32.totalorder %s531_s12, 2  ;;  %p603_p11 = por %p91_p7, %p35_p0 }
  0x11   : > { %p607_p12 = por %p97_p8, %p41_p3  ;;  %s612_s23 = sand.u32 1, %s527_s11  }
  0x12   : > { %s774_s21 = scalar_select %p603_p11, 1, 0 }
  0x13   : > { %s775_s22 = scalar_select %p607_p12, 1, 0 }
  0x14   : > { %s335_s24 = sshll.u32 %s531_s12, 7  ;;  %s334_s25 = sshll.u32 %s612_s23, 3 }
  0x15   : > { %s621_s28 = scalar_lea.hbm %s767_s0, %s335_s24  ;;  %s121_s29 = scalar_lea.vmem [#allocation2], %s334_s25 }
  0x16   : > { %s128_s30 = sshll.u32 %s121_s29, 4  ;;  %p627_p13 = pnand %p363_p10, %p592_p5  ;;  %s631_s30 = int_to_ptr.vmem [resolvable:$true] %s128_s30 }
  0x17   : > { %s118_s4 = scalar_lea.sflag [#allocation3], %s612_s23  ;;  %s401_s5 = scalar_lea.hbm %s621_s28, 128 }
  0x18   : > { %p402_p2 = scmp.ne.s32.totalorder %s621_s28, %s401_s5  ;;  %p403_p3 = pneg %p627_p13 }
  0x19   : > { %s406_s8 = scalar_lea.hbm %s767_s0, 256  ;;  %p407_p5 = scmp.lt.u32.totalorder %s621_s28, %s767_s0 }
  0x1a   : > { %p404_p4 = pnand %p403_p3, %p402_p2  ;;  %p408_p8 = scmp.lt.u32.totalorder %s406_s8, %s401_s5 }
  0x1b   : > { %p410_p9 = scmp.lt.u32.totalorder %s401_s5, %s621_s28 }
  0x1c   : > { %p405_p7 = pneg %p404_p4  ;;  %p409_p10 = por %p408_p8, %p407_p5 }
  0x1e   : > { %p411_p0 = por %p410_p9, %p409_p10 }
  0x20   : > { %p412_p1 = pnand %p411_p0, %p405_p7 }
  0x22   : > { %415 = shalt.err (!%p412_p1)
}
  0x23   : > { %s416_s17 = scalar_lea.vmem %s631_s30, 128  ;;  %s533_s19 = smov [#allocation2]  }
  0x24   : > { %p417_p2 = scmp.ne.s32.totalorder %s631_s30, %s416_s17  ;;  %s421_s26 = sshll.u32 %s533_s19, 4  ;;  %s422_s26 = int_to_ptr.vmem [resolvable:$false] %s421_s26 }
  0x25   : > { %s423_s27 = scalar_lea.vmem %s422_s26, 256  ;;  %p424_p11 = scmp.lt.s32.totalorder %s631_s30, %s422_s26 }
  0x26   : > { %p419_p4 = pnand %p417_p2, %p403_p3  ;;  %p425_p5 = scmp.lt.s32.totalorder %s423_s27, %s416_s17 }
  0x28   : > { %p420_p12 = pneg %p419_p4  ;;  %p426_p8 = por %p425_p5, %p424_p11 }
  0x2a   : > { %p427_p9 = pnand %p426_p8, %p420_p12 }
  0x2c   : > { %430 = shalt.err (!%p427_p9)
}
  0x2d   : > { %355 = dma.hbm_to_vmem [thread:$0]  (!%p627_p13), %s621_s28, 128, %s631_s30, %s118_s4  }
  0x2e   : > { %p777_p0 = scmp.lt.s32.totalorder %s531_s12, 3  ;;  %p778_p1 = scmp.ge.s32.totalorder %s531_s12, 1 }
  0x2f   : > { %s674_s7 = scalar_lea.hbm %s768_s1, %s335_s24  ;;  %s139_s8 = scalar_lea.vmem [#allocation5], %s334_s25 }
  0x30   : > { %p665_p7 = pnand %p778_p1, %p777_p0  ;;  %s146_s14 = sshll.u32 %s139_s8, 4  ;;  %s147_s14 = int_to_ptr.vmem [resolvable:$true] %s146_s14 }
  0x31   : > { %s136_s28 = scalar_lea.sflag [#allocation6], %s612_s23  ;;  %s431_s30 = scalar_lea.hbm %s674_s7, 128 }
  0x32   : > { %s779_s29 = scalar_select %p665_p7, 1, 0 }
  0x33   : > { %p432_p11 = scmp.ne.s32.totalorder %s674_s7, %s431_s30  ;;  %s436_s24 = scalar_lea.hbm %s768_s1, 256 }
  0x34   : > { %p437_p2 = scmp.lt.u32.totalorder %s674_s7, %s768_s1  ;;  %p438_p4 = scmp.lt.u32.totalorder %s436_s24, %s431_s30 }
  0x35   : > { %p434_p12 = pnand %p432_p11, %p403_p3  ;;  %p440_p8 = scmp.lt.u32.totalorder %s431_s30, %s674_s7 }
  0x36   : > { %p439_p5 = por %p438_p4, %p437_p2 }
  0x37   : > { %p435_p10 = pneg %p434_p12 }
  0x38   : > { %p441_p9 = por %p440_p8, %p439_p5 }
  0x3a   : > { %p442_p0 = pnand %p441_p9, %p435_p10 }
  0x3c   : > { %445 = shalt.err (!%p442_p0)
}
  0x3d   : > { %s446_s23 = scalar_lea.vmem %s147_s14, 128  ;;  %s534_s25 = smov [#allocation5]  }
  0x3e   : > { %p447_p1 = scmp.ne.s32.totalorder %s147_s14, %s446_s23  ;;  %s451_s26 = sshll.u32 %s534_s25, 4  ;;  %s452_s26 = int_to_ptr.vmem [resolvable:$false] %s451_s26 }
  0x3f   : > { %s453_s27 = scalar_lea.vmem %s452_s26, 256  ;;  %p454_p6 = scmp.lt.s32.totalorder %s147_s14, %s452_s26 }
  0x40   : > { %p449_p11 = pnand %p447_p1, %p403_p3  ;;  %p455_p7 = scmp.lt.s32.totalorder %s453_s27, %s446_s23 }
  0x42   : > { %p450_p12 = pneg %p449_p11  ;;  %p456_p2 = por %p455_p7, %p454_p6 }
  0x44   : > { %p457_p4 = pnand %p456_p2, %p450_p12 }
  0x46   : > { %460 = shalt.err (!%p457_p4)
}
  0x47   : > { %358 = dma.hbm_to_vmem [thread:$0]  (!%p627_p13), %s674_s7, 128, %s147_s14, %s136_s28  }
  0x48   : > { %p780_p10 = scmp.ne.s32.totalorder %s779_s29, 0 }
  0x49   : > { %s701_s5 = sand.u32 (!%p780_p10), 1, %s523_s10   ;;  %p781_p6 = scmp.ne.s32.totalorder (!%p780_p10), %s773_s20, 0 }
  0x4a   : > { %155 = sbr.rel (%p780_p10) target bundleno = 349 (0x15d), region = 28  ;;  %s704_s6 = sshll.u32 (!%p780_p10), %s701_s5, 3 }
  0x4b   : > { %s158_s8 = scalar_lea.sflag (!%p780_p10), [#allocation3], %s701_s5  ;;  %s161_s30 = scalar_lea.vmem (!%p780_p10), [#allocation2], %s704_s6 }
  0x51   : > { %506 = dma.done.wait (%p781_p6), %s158_s8, 128  }
  0x52   : > { %508 = vsyncadd (%p781_p6), %s158_s8, 4294967168  ;;  %s167_s3 = scalar_lea.sflag [#allocation6], %s701_s5  ;;  %s170_s29 = scalar_lea.vmem [#allocation5], %s704_s6 }
  0x53   : > { %510 = dma.done.wait (%p781_p6), %s167_s3, 128  }
  0x54   : > { %512 = vsyncadd (%p781_p6), %s167_s3, 4294967168  ;;  %v196_v0 = vld [vmem:[%s161_s30] sm:$0xff]  ;;  %s535_s7 = smov 126   ;;  %v197_v1 = vld [vmem:[%s170_s29] sm:$0xff]  ;;  %s536_s20 = smov 2   ;;  %v216_v16 = vlaneseq }
  0x55   : > { %200 = vrot.lane.b32.xlu0 %v196_v0, %s535_s7  ;;  %v205_v7 = vmul.f32 0.1, %v196_v0  ;;  %s343_s14 = sshll.u32 %s574_s13, 7  ;;  %s195_s28 = scalar_lea.vmem [#allocation7], %s704_s6 }
  0x56   : > { %v217_v17 = vand.u32 127, %v216_v16  ;;  %s238_s4 = sshll.u32 %s195_s28, 4  ;;  %s723_s17 = scalar_lea.hbm %s769_s2, %s343_s14  ;;  %s725_s4 = int_to_ptr.vmem [resolvable:$true] %s238_s4 }
  0x57   : > { %s225_s19 = scalar_lea.sflag [#allocation4], %s701_s5  ;;  %s461_s23 = scalar_lea.vmem %s725_s4, 128 }
  0x58   : > { %v218_v18 = vand.u32 2, %v217_v17  ;;  %p462_p13 = scmp.ne.s32.totalorder %s725_s4, %s461_s23  ;;  %p782_p3 = scmp.ne.s32.totalorder %s774_s21, 0 }
  0x59   : > { %198 = vrot.lane.b32.xlu0 %v197_v1, %s535_s7  ;;  %s537_s13 = smov [#allocation7]  }
  0x5a   : > { %vm219_vm0 = vcmp.eq.s32.totalorder %v218_v18, 0  ;;  %p463_p7 = pnand %p462_p13, %p782_p3  ;;  %s465_s25 = sshll.u32 %s537_s13, 4  ;;  %s466_s25 = int_to_ptr.vmem [resolvable:$false] %s465_s25 }
  0x5b   : > { %s467_s26 = scalar_lea.vmem %s466_s25, 256  ;;  %p468_p8 = scmp.lt.s32.totalorder %s725_s4, %s466_s25 }
  0x5c   : > { %p464_p5 = pneg %p463_p7  ;;  %p469_p9 = scmp.lt.s32.totalorder %s467_s26, %s461_s23 }
  0x5e   : > { %p470_p0 = por %p469_p9, %p468_p8 }
  0x60   : > { %p471_p1 = pnand %p470_p0, %p464_p5 }
  0xc7   : > { %v201_v2 = vpop.permute.xlu0 %200 }
  0xc8   : > { %v208_v3 = vmul.f32 0.2, %v201_v2 }
  0xca   : > { %v209_v4 = vmul.f32 1.442695, %v208_v3 }
  0xcb   : > { %v199_v5 = vpop.permute.xlu0 %198 }
  0xcc   : > { %399 = vpow2.f32 %v209_v4  ;;  %v202_v6 = vsub.f32 %v199_v5, %v197_v1 }
  0xce   : > { %v203_v8 = vmul.f32 0.5, %v202_v6  ;;  %v206_v10 = vmul.f32 %v205_v7, %v202_v6 }
  0xd0   : > { %v204_v9 = vadd.f32 %v203_v8, %v197_v1 }
  0xd2   : > { %v207_v12 = vadd.f32 %v206_v10, %v204_v9 }
  0xd6   : > { %v400_v11 = vpop.eup %399 }
  0xd7   : > { %v211_v13 = vmul.f32 %v400_v11, %v203_v8 }
  0xd9   : > { %v213_v14 = vadd.f32 %v211_v13, %v207_v12  ;;  %v212_v15 = vsub.f32 %v207_v12, %v211_v13 }
  0xdb   : > { %214 = vrot.lane.b32.xlu1 %v213_v14, %s536_s20 }
 0x14d   : > { %v215_v19 = vpop.permute.xlu1 %214 }
 0x14e   : > { %v222_v20 = vsel %vm219_vm0, %v212_v15, %v215_v19 }
 0x14f   : > { %223 = vst [vmem:[%s195_s28] sm:$0xff] %v222_v20 }
 0x150   : > { %474 = shalt.err (!%p471_p1)
}
 0x151   : > { %s475_s27 = scalar_lea.hbm %s723_s17, 128  ;;  %s479_s8 = scalar_lea.hbm %s769_s2, 256 }
 0x152   : > { %p476_p11 = scmp.ne.s32.totalorder %s723_s17, %s475_s27  ;;  %p480_p4 = scmp.lt.u32.totalorder %s723_s17, %s769_s2 }
 0x153   : > { %p481_p10 = scmp.lt.u32.totalorder %s479_s8, %s475_s27  ;;  %p483_p13 = scmp.lt.u32.totalorder %s475_s27, %s723_s17 }
 0x154   : > { %p477_p12 = pnand %p476_p11, %p782_p3 }
 0x155   : > { %p482_p6 = por %p481_p10, %p480_p4 }
 0x156   : > { %p478_p2 = pneg %p477_p12 }
 0x157   : > { %p484_p7 = por %p483_p13, %p482_p6 }
 0x159   : > { %p485_p5 = pnand %p484_p7, %p478_p2 }
 0x15b   : > { %488 = shalt.err (!%p485_p5)
}
 0x15c   : > { %350 = dma.vmem_to_hbm [thread:$0]  (%p782_p3), %s725_s4, 128, %s723_s17, %s225_s19  }
 0x15d PF: > { %s250_s29 = sand.u32 1, %s519_s9   ;;  %p783_p8 = scmp.ne.s32.totalorder %s775_s22, 0 }
 0x15e   : > { %p784_p9 = scmp.ge.s32.totalorder %s531_s12, 2  ;;  %s251_s7 = scalar_lea.sflag [#allocation4], %s250_s29 }
 0x160   : > { %p360_p0 = pnand %p784_p9, %p783_p8 }
 0x162   : > { %514 = dma.done.wait (!%p360_p0), %s251_s7, 128  }
 0x163   : > { %516 = vsyncadd (!%p360_p0), %s251_s7, 4294967168  ;;  %p18_p1 = scmp.ge.s32.totalorder %s578_s15, 4   ;;  %s785_s9 = smov %s523_s10 }
 0x164   : > { %s786_s10 = smov %s527_s11  ;;  %s787_s11 = smov %s590_s18 }
 0x165   : > { %s788_s12 = smov %s578_s15  ;;  %20 = sbr.rel (!%p18_p1) target bundleno = 7 (0x7), region = 86 }
 0x16c   :  { %256 = vsyncpa [#allocation3], 1 }
 0x16d   :  { %258 = vsyncpa [#allocation3 + $0x1], 1 }
 0x16e   :  { %259 = vsyncpa [#allocation6], 1 }
 0x16f   :  { %261 = vsyncpa [#allocation6 + $0x1], 1 }
 0x170   :  { %262 = vsyncpa [#allocation4], 1 }
 0x171   :  { %264 = vsyncpa [#allocation4 + $0x1], 1 }

</bundles_post_ra>
